<compile_context>
chip_gen: v7x
topology: tpu7x:2x2x1
jax: 0.10.0
libtpu: 0.0.40
codegen_flags: <defaults>
</compile_context>

<pallas_src>
import math

import jax
import jax.numpy as jnp
from jax.experimental import pallas as pl
from jax.experimental.pallas import tpu as pltpu


def entropy_kernel(w_ref, b_ref, x_ref, o_ref):
    """One row tile: entropy over the lane axis + scalar affine + sigmoid.

    w_ref, b_ref : SMEM scalars, shape (1,)
    x_ref        : VMEM [TR, feat]   (any float dtype; math is f32)
    o_ref        : VMEM [TR, 1] f32
    """
    # Cast-on-load: bf16 inputs halve HBM traffic (this kernel is read-bound),
    # while the arithmetic stays f32 (required on v5e: no bf16 VPU/EUP).
    x = x_ref[...].astype(jnp.float32)

    # xlogy-style guard: x*log(x) := 0 at x == 0 (also shields any padded /
    # out-of-bounds garbage rows in the boundary tile).
    xlogx = jnp.where(x > 0.0, x * jnp.log(jnp.where(x > 0.0, x, 1.0)), 0.0)

    v = -jnp.sum(xlogx, axis=-1, keepdims=True)          # [TR, 1]

    # Linear(1, 1): scalar affine with SMEM weight / bias.
    m = v * w_ref[0] + b_ref[0]

    # sigmoid(m) = 1 / (1 + exp(-m)); exp lands on the EUP and the approximate
    # reciprocal avoids a VPU divide sequence.
    o_ref[...] = pl.reciprocal(1.0 + jnp.exp(-m), approx=True)


def _vmem_capacity_bytes() -> int:
    """Physical VMEM per TensorCore (128 MiB on v5e/v6e, 64 MiB on v7x)."""
    try:
        cap = getattr(pltpu.get_tpu_info(), "vmem_capacity_bytes", None)
        if cap:
            return int(cap)
    except Exception:
        pass
    return 128 * 1024 * 1024


def entropy_forward(x, w, b, *, tile_rows=None):
    """x: float array of shape (..., feat). Returns f32 array (..., 1)."""
    orig_shape = x.shape
    feat = orig_shape[-1]
    rows = math.prod(orig_shape[:-1]) if len(orig_shape) > 1 else 1
    x2d = x.reshape(rows, feat)

    # Pad tiny row counts up to the 8-sublane minimum (padding rows are ones,
    # so their entropy is 0 and they are sliced off below).
    if rows < 8:
        x2d = jnp.concatenate(
            [x2d, jnp.ones((8 - rows, feat), x2d.dtype)], axis=0)
    padded_rows = x2d.shape[0]

    in_bytes = jnp.dtype(x2d.dtype).itemsize

    # Generation-aware VMEM budget: scope half of physical VMEM (64 MiB on
    # v5e/v6e, 32 MiB on v7x) and keep the two in-flight input buffers inside
    # half of that so double-buffered pipelining always survives.
    vmem_limit_bytes = min(_vmem_capacity_bytes() // 2, 64 * 1024 * 1024)
    if tile_rows is None:
        budget = vmem_limit_bytes // 2          # headroom for output / temps
        tr = budget // (2 * feat * in_bytes)    # 2 input buffers in flight
        tr = min(tr, 1024, padded_rows)         # 512-1024 rows ~ HBM roofline
        tile_rows = max(8, (tr // 8) * 8)
    # TODO(synk): if feat alone ever exceeds the per-tile VMEM budget, add a
    # second "arbitrary" grid axis over feat with a VMEM scratch accumulator
    # (pl.when init on k==0, affine+sigmoid+store on k==last).

    grid = (pl.cdiv(padded_rows, tile_rows),)

    cost = pl.CostEstimate(
        flops=3 * rows * feat,                       # mul + add-reduce + affine
        transcendentals=rows * feat + 2 * rows,      # log / elem, exp+rcp / row
        bytes_accessed=rows * feat * in_bytes + rows * 4,
    )

    out = pl.pallas_call(
        entropy_kernel,
        out_shape=jax.ShapeDtypeStruct((padded_rows, 1), jnp.float32),
        grid=grid,
        in_specs=[
            pl.BlockSpec(memory_space=pltpu.SMEM),               # weight (1,)
            pl.BlockSpec(memory_space=pltpu.SMEM),               # bias   (1,)
            pl.BlockSpec((tile_rows, feat), lambda i: (i, 0)),   # x row tile
        ],
        out_specs=pl.BlockSpec((tile_rows, 1), lambda i: (i, 0)),
        compiler_params=pltpu.CompilerParams(
            dimension_semantics=("parallel",),   # megacore-shardable on v7x
            vmem_limit_bytes=vmem_limit_bytes,
        ),
        cost_estimate=cost,
    )(w.reshape(-1)[:1], b.reshape(-1)[:1], x2d)

    return out[:rows].reshape(orig_shape[:-1] + (1,))


if __name__ == "__main__":
    key = jax.random.PRNGKey(0)
    kx, kw, kb = jax.random.split(key, 3)

    # Small shape consistent with the module: reduce over the last axis.
    B, C, S, N = 2, 4, 16, 16            # rows = 2*4*16 = 128, feat = 16
    # x must be positive for log(x); use a probability-like positive input.
    x = jax.random.uniform(kx, (B, C, S, N), dtype=jnp.float32,
                           minval=0.05, maxval=1.0)

    # nn.Linear(1, 1) parameters: weight (1, 1), bias (1,).
    w = jax.random.uniform(kw, (1, 1), dtype=jnp.float32, minval=-1.0, maxval=1.0)
    b = jax.random.uniform(kb, (1,), dtype=jnp.float32, minval=-1.0, maxval=1.0)

    e = jax.block_until_ready(entropy_forward(x, w, b))

    # Pure-JAX reference check.
    v_ref = -jnp.sum(x * jnp.log(x), axis=-1, keepdims=True)
    e_ref = jax.nn.sigmoid(v_ref * w[0, 0] + b[0])

    assert e.shape == (B, C, S, 1), e.shape
    # Slightly relaxed tolerance: sigmoid uses the EUP approximate reciprocal.
    assert jnp.allclose(e, e_ref, atol=2e-3, rtol=2e-3), \
        float(jnp.max(jnp.abs(e - e_ref)))

    print("KERNEL_OK")
</pallas_src>

<mosaic_0001>
module attributes {stable_mosaic.version = 11 : i64} {
  func.func @entropy_kernel(%arg0: i32, %arg1: memref<1xf32, #tpu.memory_space<smem>>, %arg2: memref<1xf32, #tpu.memory_space<smem>>, %arg3: memref<128x16xf32, #tpu.memory_space<vmem>>, %arg4: memref<128x1xf32, #tpu.memory_space<vmem>>) attributes {dimension_semantics = [#tpu.dimension_semantics<parallel>], iteration_bounds = array<i64: 1>, scalar_prefetch = 0 : i64, scratch_operands = 0 : i64, tpu.core_type = #tpu.core_type<tc>, window_params = [{transform_indices = @transform_0, window_bounds = array<i64: 1>}, {transform_indices = @transform_1, window_bounds = array<i64: 1>}, {transform_indices = @transform_2, window_bounds = array<i64: 128, 16>}, {transform_indices = @transform_3, window_bounds = array<i64: 128, 1>}]} {
    %c0 = arith.constant 0 : index
    %c0_0 = arith.constant 0 : index
    %0 = vector.load %arg3[%c0, %c0_0] : memref<128x16xf32, #tpu.memory_space<vmem>>, vector<128x16xf32>
    %cst = arith.constant 0.000000e+00 : f32
    %1 = vector.broadcast %cst : f32 to vector<128x16xf32>
    %2 = arith.cmpf ogt, %0, %1 : vector<128x16xf32>
    %cst_1 = arith.constant 0.000000e+00 : f32
    %3 = vector.broadcast %cst_1 : f32 to vector<128x16xf32>
    %4 = arith.cmpf ogt, %0, %3 : vector<128x16xf32>
    %cst_2 = arith.constant 1.000000e+00 : f32
    %5 = vector.broadcast %cst_2 : f32 to vector<128x16xf32>
    %6 = arith.select %4, %0, %5 : vector<128x16xi1>, vector<128x16xf32>
    %7 = math.log %6 : vector<128x16xf32>
    %8 = arith.mulf %0, %7 : vector<128x16xf32>
    %cst_3 = arith.constant 0.000000e+00 : f32
    %9 = vector.broadcast %cst_3 : f32 to vector<128x16xf32>
    %10 = arith.select %2, %8, %9 : vector<128x16xi1>, vector<128x16xf32>
    %cst_4 = arith.constant dense<0.000000e+00> : vector<128xf32>
    %11 = vector.multi_reduction <add>, %10, %cst_4 [1] : vector<128x16xf32> to vector<128xf32>
    %12 = vector.shape_cast %11 : vector<128xf32> to vector<128x1xf32>
    %cst_5 = arith.constant 0.000000e+00 : f32
    %13 = vector.broadcast %cst_5 : f32 to vector<128x1xf32>
    %14 = arith.subf %13, %12 : vector<128x1xf32>
    %c0_6 = arith.constant 0 : index
    %15 = memref.load %arg1[%c0_6] : memref<1xf32, #tpu.memory_space<smem>>
    %16 = vector.broadcast %15 : f32 to vector<128x1xf32>
    %17 = arith.mulf %14, %16 : vector<128x1xf32>
    %c0_7 = arith.constant 0 : index
    %18 = memref.load %arg2[%c0_7] : memref<1xf32, #tpu.memory_space<smem>>
    %19 = vector.broadcast %18 : f32 to vector<128x1xf32>
    %20 = arith.addf %17, %19 : vector<128x1xf32>
    %cst_8 = arith.constant 0.000000e+00 : f32
    %21 = vector.broadcast %cst_8 : f32 to vector<128x1xf32>
    %22 = arith.subf %21, %20 : vector<128x1xf32>
    %23 = math.exp %22 : vector<128x1xf32>
    %cst_9 = arith.constant 1.000000e+00 : f32
    %24 = vector.broadcast %cst_9 : f32 to vector<128x1xf32>
    %25 = arith.addf %24, %23 : vector<128x1xf32>
    %26 = tpu.reciprocal %25 {approx = true} : vector<128x1xf32> -> vector<128x1xf32>
    %c0_10 = arith.constant 0 : index
    %c0_11 = arith.constant 0 : index
    %27 = vector.load %arg4[%c0_10, %c0_11] : memref<128x1xf32, #tpu.memory_space<vmem>>, vector<128x1xf32>
    tpu.vector_store %arg4[%c0_10, %c0_11], %26 {strides = array<i32>} : memref<128x1xf32, #tpu.memory_space<vmem>>, vector<128x1xf32>,
    return
  }
  func.func @transform_0(%arg0: i32) -> i32 {
    %c0_i32 = arith.constant 0 : i32
    %c0_i32_0 = arith.constant 0 : i32
    return %c0_i32 : i32
  }
  func.func @transform_1(%arg0: i32) -> i32 {
    %c0_i32 = arith.constant 0 : i32
    %c0_i32_0 = arith.constant 0 : i32
    return %c0_i32 : i32
  }
  func.func @transform_2(%arg0: i32) -> (i32, i32) {
    %c0_i32 = arith.constant 0 : i32
    %c0_i32_0 = arith.constant 0 : i32
    return %arg0, %c0_i32 : i32, i32
  }
  func.func @transform_3(%arg0: i32) -> (i32, i32) {
    %c0_i32 = arith.constant 0 : i32
    %c0_i32_0 = arith.constant 0 : i32
    return %arg0, %c0_i32 : i32, i32
  }
}

</mosaic_0001>

<bundles_post_ra>
// kernel: tpu_custom_call.1
= control target key start
LH: loop header
LB: loop body
LE: loop exit
PB: predicated region body
PF: predicated region fallthrough
CT: control target
= control target key end

     0   :  { %10 = vsyncpa [#allocation5], 0  ;;  %s778_s0 = inlined_call_operand.<no memory space> [shape: f32[1], index: 0, kind: input, shape index: {}]   ;;  %s779_s1 = inlined_call_operand.<no memory space> [shape: f32[1], index: 1, kind: input, shape index: {}]   ;;  %s780_s2 = inlined_call_operand.hbm [shape: f32[128,16], index: 2, kind: input, shape index: {}]   ;;  %s781_s3 = inlined_call_operand.hbm [shape: f32[128,1], index: 3, kind: output, shape index: {}]  }
   0x1   :  { %11 = vsyncpa [#allocation6], 0  ;;  %s506_s12 = smov [#allocation4]   ;;  %s458_s16 = scalar_lea.hbm %s780_s2, 2048 }
   0x2   :  { %s21_s13 = sshll.u32 %s506_s12, 4  ;;  %p459_p0 = scmp.ne.s32.totalorder %s780_s2, %s458_s16  ;;  %s22_s13 = int_to_ptr.vmem [resolvable:$true] %s21_s13 }
   0x3   :  { %p462_p1 = scmp.lt.u32.totalorder %s458_s16, %s780_s2 }
   0x5   :  { %p464_p2 = pnand %p462_p1, %p459_p0 }
   0x7   :  { %467 = shalt.err (!%p464_p2)
}
   0x8   :  { %s468_s21 = scalar_lea.vmem %s22_s13, 2048  ;;  %p473_p4 = scmp.lt.s32.totalorder %s22_s13, %s22_s13 }
   0x9   :  { %p469_p3 = scmp.ne.s32.totalorder %s22_s13, %s468_s21  ;;  %p474_p5 = scmp.lt.s32.totalorder %s468_s21, %s468_s21 }
   0xb   :  { %p475_p6 = por %p474_p5, %p473_p4 }
   0xd   :  { %p476_p7 = pnand %p475_p6, %p469_p3 }
   0xf   :  { %479 = shalt.err (!%p476_p7)
}
  0x10   :  { %s507_s22 = smov 128   ;;  %s508_s23 = smov 8  }
  0x11   :  { %27 = dma.hbm_to_vmem [thread:$0]  %s780_s2, 2048, %s22_s13, [#allocation5], %s507_s22, %s507_s22, %s508_s23  }
  0x12   :  { %502 = dma.done.wait [#allocation5], 2048  }
  0x13   :  { %503 = vsyncadd [#allocation5], 4294965248  ;;  %v545_v0 = vld [vmem:[#allocation4 + $0x10] sm:$0xff]  ;;  %v547_v1 = vld [vmem:[#allocation4] sm:$0xff] }
  0x14   :  { %v549_v2 = vld [vmem:[#allocation4 + $0x18] sm:$0xff]  ;;  %vm49_vm0 = vcmp.gt.f32.partialorder %v545_v0, 0.0  ;;  %vm47_vm1 = vcmp.gt.f32.partialorder %v547_v1, 0.0  ;;  %v554_v3 = vld [vmem:[#allocation4 + $0x8] sm:$0xff]  ;;  %v558_v5 = vld [vmem:[#allocation4 + $0x20] sm:$0xff] }
  0x15   :  { %vm50_vm2 = vcmp.gt.f32.partialorder %v549_v2, 0.0  ;;  %v556_v4 = vld [vmem:[#allocation4 + $0x28] sm:$0xff]  ;;  %v65_v6 = vsel %vm49_vm0, %v545_v0, 1.0  ;;  %v63_v7 = vsel %vm47_vm1, %v547_v1, 1.0  ;;  %vm48_vm3 = vcmp.gt.f32.partialorder %v554_v3, 0.0  ;;  %v570_v9 = vld [vmem:[#allocation4 + $0x38] sm:$0xff] }
  0x16   :  { %v66_v8 = vsel %vm50_vm2, %v549_v2, 1.0  ;;  %v572_v10 = vld [vmem:[#allocation4 + $0x30] sm:$0xff]  ;;  %362 = vlog2.f32 %v65_v6  ;;  %v64_v11 = vsel %vm48_vm3, %v554_v3, 1.0  ;;  %vm52_vm4 = vcmp.gt.f32.partialorder %v556_v4, 0.0  ;;  %v579_v12 = vld [vmem:[#allocation4 + $0x48] sm:$0xff]  ;;  %v581_v13 = vld [vmem:[#allocation4 + $0x40] sm:$0xff] }
  0x17   :  { %vm51_vm5 = vcmp.gt.f32.partialorder %v558_v5, 0.0  ;;  %364 = vlog2.f32 %v63_v7  ;;  %v68_v14 = vsel %vm52_vm4, %v556_v4, 1.0  ;;  %vm54_vm6 = vcmp.gt.f32.partialorder %v570_v9, 0.0  ;;  %v587_v15 = vld [vmem:[#allocation4 + $0x58] sm:$0xff]  ;;  %v594_v17 = vld [vmem:[#allocation4 + $0x50] sm:$0xff]  ;;  %v600_v19 = vld [vmem:[#allocation4 + $0x68] sm:$0xff] }
  0x18   :  { %366 = vlog2.f32 %v66_v8  ;;  %v67_v16 = vsel %vm51_vm5, %v558_v5, 1.0  ;;  %vm53_vm7 = vcmp.gt.f32.partialorder %v572_v10, 0.0  ;;  %vm56_vm8 = vcmp.gt.f32.partialorder %v579_v12, 0.0  ;;  %v606_v21 = vld [vmem:[#allocation4 + $0x60] sm:$0xff]  ;;  %v612_v23 = vld [vmem:[#allocation4 + $0x78] sm:$0xff]  ;;  %v618_v25 = vld [vmem:[#allocation4 + $0x70] sm:$0xff] }
  0x19   :  { %368 = vlog2.f32 %v64_v11  ;;  %v70_v18 = vsel %vm54_vm6, %v570_v9, 1.0  ;;  %vm55_vm9 = vcmp.gt.f32.partialorder %v581_v13, 0.0  ;;  %v69_v20 = vsel %vm53_vm7, %v572_v10, 1.0 }
  0x1a   :  { %370 = vlog2.f32 %v68_v14  ;;  %vm58_vm10 = vcmp.gt.f32.partialorder %v587_v15, 0.0  ;;  %v72_v22 = vsel %vm56_vm8, %v579_v12, 1.0  ;;  %vm57_vm11 = vcmp.gt.f32.partialorder %v594_v17, 0.0 }
  0x1b   :  { %372 = vlog2.f32 %v67_v16  ;;  %v71_v24 = vsel %vm55_vm9, %v581_v13, 1.0  ;;  %vm782_vm12 = vcmp.gt.f32.partialorder %v600_v19, 0.0  ;;  %v74_v26 = vsel %vm58_vm10, %v587_v15, 1.0 }
  0x1c   :  { %374 = vlog2.f32 %v70_v18  ;;  %vm59_vm13 = vcmp.gt.f32.partialorder %v606_v21, 0.0  ;;  %v73_v27 = vsel %vm57_vm11, %v594_v17, 1.0  ;;  %vm62_vm14 = vcmp.gt.f32.partialorder %v612_v23, 0.0 }
  0x1d   :  { %376 = vlog2.f32 %v69_v20  ;;  %v76_v28 = vsel %vm782_vm12, %v600_v19, 1.0  ;;  %vm61_vm15 = vcmp.gt.f32.partialorder %v618_v25, 0.0  ;;  %v75_v30 = vsel %vm59_vm13, %v606_v21, 1.0 }
  0x1e   :  { %378 = vlog2.f32 %v72_v22  ;;  %v78_v33 = vsel %vm62_vm14, %v612_v23, 1.0  ;;  %v77_v36 = vsel %vm61_vm15, %v618_v25, 1.0  ;;  %vm143_vm12 = vcmask 130048  }
  0x1f   :  { %380 = vlog2.f32 %v71_v24 }
  0x20   :  { %v363_v29 = vpop.eup %362  ;;  %382 = vlog2.f32 %v74_v26 }
  0x21   :  { %v365_v31 = vpop.eup %364  ;;  %v84_v32 = vmul.f32 0.6931472, %v363_v29  ;;  %384 = vlog2.f32 %v73_v27 }
  0x22   :  { %v367_v34 = vpop.eup %366  ;;  %v80_v35 = vmul.f32 0.6931472, %v365_v31  ;;  %386 = vlog2.f32 %v76_v28 }
  0x23   :  { %v369_v37 = vpop.eup %368  ;;  %v113_v38 = vmul.f32 %v84_v32, %v545_v0  ;;  %v86_v39 = vmul.f32 0.6931472, %v367_v34  ;;  %388 = vlog2.f32 %v75_v30 }
  0x24   :  { %v371_v40 = vpop.eup %370  ;;  %v111_v41 = vmul.f32 %v80_v35, %v547_v1  ;;  %v82_v42 = vmul.f32 0.6931472, %v369_v37  ;;  %390 = vlog2.f32 %v78_v33 }
  0x25   :  { %v373_v43 = vpop.eup %372  ;;  %v129_v44 = vsel %vm49_vm0, %v113_v38, 0.0  ;;  %v114_v45 = vmul.f32 %v86_v39, %v549_v2  ;;  %v90_v46 = vmul.f32 0.6931472, %v371_v40  ;;  %392 = vlog2.f32 %v77_v36 }
  0x26   :  { %v375_v47 = vpop.eup %374  ;;  %v150_v48 = vsel %vm143_vm12, %v129_v44, 0.0  ;;  %v127_v49 = vsel %vm47_vm1, %v111_v41, 0.0  ;;  %v112_v50 = vmul.f32 %v82_v42, %v554_v3  ;;  %v88_v51 = vmul.f32 0.6931472, %v373_v43 }
  0x27   :  { %v377_v52 = vpop.eup %376  ;;  %151 = vadd.xlane.f32.xlu1 %v150_v48  ;;  %v144_v53 = vsel %vm143_vm12, %v127_v49, 0.0  ;;  %v130_v54 = vsel %vm50_vm2, %v114_v45, 0.0  ;;  %v116_v55 = vmul.f32 %v90_v46, %v556_v4  ;;  %v94_v56 = vmul.f32 0.6931472, %v375_v47 }
  0x28   :  { %v379_v57 = vpop.eup %378  ;;  %145 = vadd.xlane.f32.xlu0 %v144_v53  ;;  %v153_v58 = vsel %vm143_vm12, %v130_v54, 0.0  ;;  %v128_v59 = vsel %vm48_vm3, %v112_v50, 0.0  ;;  %v115_v60 = vmul.f32 %v88_v51, %v558_v5  ;;  %v92_v61 = vmul.f32 0.6931472, %v377_v52 }
  0x29   :  { %v381_v62 = vpop.eup %380  ;;  %v147_v63 = vsel %vm143_vm12, %v128_v59, 0.0  ;;  %v132_v0 = vsel %vm52_vm4, %v116_v55, 0.0  ;;  %v118_v1 = vmul.f32 %v94_v56, %v570_v9  ;;  %v98_v2 = vmul.f32 0.6931472, %v379_v57 }
  0x2a   :  { %v383_v6 = vpop.eup %382  ;;  %v131_v7 = vsel %vm51_vm5, %v115_v60, 0.0  ;;  %v117_v8 = vmul.f32 %v92_v61, %v572_v10  ;;  %v96_v3 = vmul.f32 0.6931472, %v381_v62  ;;  %v159_v16 = vsel %vm143_vm12, %v132_v0, 0.0 }
  0x2b   :  { %v385_v11 = vpop.eup %384  ;;  %154 = vadd.xlane.f32.xlu1 %v153_v58  ;;  %v156_v4 = vsel %vm143_vm12, %v131_v7, 0.0  ;;  %v134_v20 = vsel %vm54_vm6, %v118_v1, 0.0  ;;  %v120_v22 = vmul.f32 %v98_v2, %v579_v12  ;;  %v102_v24 = vmul.f32 0.6931472, %v383_v6 }
  0x2c   :  { %v387_v14 = vpop.eup %386  ;;  %148 = vadd.xlane.f32.xlu0 %v147_v63  ;;  %v133_v26 = vsel %vm53_vm7, %v117_v8, 0.0  ;;  %v119_v27 = vmul.f32 %v96_v3, %v581_v13  ;;  %v100_v28 = vmul.f32 0.6931472, %v385_v11  ;;  %v165_v30 = vsel %vm143_vm12, %v134_v20, 0.0 }
  0x2d   :  { %v389_v18 = vpop.eup %388  ;;  %v162_v31 = vsel %vm143_vm12, %v133_v26, 0.0  ;;  %v136_v9 = vsel %vm56_vm8, %v120_v22, 0.0  ;;  %v122_v32 = vmul.f32 %v102_v24, %v587_v15  ;;  %v106_v33 = vmul.f32 0.6931472, %v387_v14 }
  0x2e   :  { %v391_v5 = vpop.eup %390  ;;  %v135_v10 = vsel %vm55_vm9, %v119_v27, 0.0  ;;  %v121_v34 = vmul.f32 %v100_v28, %v594_v17  ;;  %v104_v35 = vmul.f32 0.6931472, %v389_v18  ;;  %v171_v36 = vsel %vm143_vm12, %v136_v9, 0.0 }
  0x2f   :  { %v393_v29 = vpop.eup %392  ;;  %160 = vadd.xlane.f32.xlu1 %v159_v16  ;;  %v168_v37 = vsel %vm143_vm12, %v135_v10, 0.0  ;;  %v138_v38 = vsel %vm58_vm10, %v122_v32, 0.0  ;;  %v124_v12 = vmul.f32 %v106_v33, %v600_v19  ;;  %v110_v39 = vmul.f32 0.6931472, %v391_v5 }
  0x30   :  { %157 = vadd.xlane.f32.xlu0 %v156_v4  ;;  %v137_v40 = vsel %vm57_vm11, %v121_v34, 0.0  ;;  %v123_v13 = vmul.f32 %v104_v35, %v606_v21  ;;  %v108_v41 = vmul.f32 0.6931472, %v393_v29  ;;  %v177_v42 = vsel %vm143_vm12, %v138_v38, 0.0 }
  0x31   :  { %v174_v43 = vsel %vm143_vm12, %v137_v40, 0.0  ;;  %vm783_vm0 = vcmp.gt.f32.partialorder %v600_v19, 0.0  ;;  %v126_v15 = vmul.f32 %v110_v39, %v612_v23  ;;  %v708_v50 = vstv %s778_s0  ;;  %s509_s0 = smov [#allocation7]  }
  0x32   :  { %v140_v44 = vsel %vm783_vm0, %v124_v12, 0.0  ;;  %v139_v45 = vsel %vm59_vm13, %v123_v13, 0.0  ;;  %v125_v17 = vmul.f32 %v108_v41, %v618_v25  ;;  %v713_v25 = vstv %s779_s1  ;;  %s346_s1 = sshll.u32 %s509_s0, 4  ;;  %s347_s1 = int_to_ptr.vmem [resolvable:$true] %s346_s1 }
  0x33   :  { %166 = vadd.xlane.f32.xlu1 %v165_v30  ;;  %v183_v46 = vsel %vm143_vm12, %v140_v44, 0.0  ;;  %v180_v47 = vsel %vm143_vm12, %v139_v45, 0.0  ;;  %v142_v48 = vsel %vm62_vm14, %v126_v15, 0.0  ;;  %vm324_vm1 = vcmask 7168   ;;  %s480_s29 = scalar_lea.vmem %s347_s1, 2048  ;;  %p485_p9 = scmp.lt.s32.totalorder %s347_s1, %s347_s1 }
  0x34   :  { %163 = vadd.xlane.f32.xlu0 %v162_v31  ;;  %v141_v19 = vsel %vm61_vm15, %v125_v17, 0.0  ;;  %v189_v49 = vsel %vm143_vm12, %v142_v48, 0.0  ;;  %p481_p8 = scmp.ne.s32.totalorder %s347_s1, %s480_s29  ;;  %p486_p10 = scmp.lt.s32.totalorder %s480_s29, %s480_s29 }
  0x35   :  { %v186_v21 = vsel %vm143_vm12, %v141_v19, 0.0 }
  0x36   :  { %p487_p11 = por %p486_p10, %p485_p9 }
  0x37   :  { %172 = vadd.xlane.f32.xlu1 %v171_v36 }
  0x38   :  { %169 = vadd.xlane.f32.xlu0 %v168_v37  ;;  %p488_p12 = pnand %p487_p11, %p481_p8 }
  0x3b   :  { %178 = vadd.xlane.f32.xlu1 %v177_v42 }
  0x3c   :  { %175 = vadd.xlane.f32.xlu0 %v174_v43 }
  0x3f   :  { %184 = vadd.xlane.f32.xlu1 %v183_v46 }
  0x40   :  { %181 = vadd.xlane.f32.xlu0 %v180_v47 }
  0x43   :  { %190 = vadd.xlane.f32.xlu1 %v189_v49 }
  0x44   :  { %187 = vadd.xlane.f32.xlu0 %v186_v21 }
  0xb4   :  { %v152_v51 = vpop.xlane.xlu1 %151 }
  0xb5   :  { %v194_v52 = vsub.f32 0.0, %v152_v51  ;;  %v146_v23 = vpop.xlane.xlu0 %145 }
  0xb6   :  { %v192_v53 = vsub.f32 0.0, %v146_v23 }
  0xb7   :  { %v212_v54 = vmul.f32 %v708_v50, %v194_v52 }
  0xb8   :  { %v210_v55 = vmul.f32 %v708_v50, %v192_v53  ;;  %v155_v56 = vpop.xlane.xlu1 %154 }
  0xb9   :  { %v230_v57 = vadd.f32 %v713_v25, %v212_v54  ;;  %v195_v58 = vsub.f32 0.0, %v155_v56  ;;  %v149_v59 = vpop.xlane.xlu0 %148 }
  0xba   :  { %v228_v60 = vadd.f32 %v713_v25, %v210_v55  ;;  %v193_v61 = vsub.f32 0.0, %v149_v59 }
  0xbb   :  { %v246_v62 = vsub.f32 0.0, %v230_v57  ;;  %v213_v63 = vmul.f32 %v708_v50, %v195_v58 }
  0xbc   :  { %v244_v0 = vsub.f32 0.0, %v228_v60  ;;  %v211_v1 = vmul.f32 %v708_v50, %v193_v61  ;;  %v161_v2 = vpop.xlane.xlu1 %160 }
  0xbd   :  { %v264_v6 = vmul.f32 1.442695, %v246_v62  ;;  %v231_v7 = vadd.f32 %v713_v25, %v213_v63  ;;  %v197_v8 = vsub.f32 0.0, %v161_v2  ;;  %v158_v3 = vpop.xlane.xlu0 %157 }
  0xbe   :  { %v260_v11 = vmul.f32 1.442695, %v244_v0  ;;  %v229_v14 = vadd.f32 %v713_v25, %v211_v1  ;;  %v196_v16 = vsub.f32 0.0, %v158_v3 }
  0xbf   :  { %394 = vpow2.f32 %v264_v6  ;;  %v247_v18 = vsub.f32 0.0, %v231_v7  ;;  %v215_v4 = vmul.f32 %v708_v50, %v197_v8 }
  0xc0   :  { %396 = vpow2.f32 %v260_v11  ;;  %v245_v20 = vsub.f32 0.0, %v229_v14  ;;  %v214_v22 = vmul.f32 %v708_v50, %v196_v16  ;;  %v167_v24 = vpop.xlane.xlu1 %166 }
  0xc1   :  { %v266_v5 = vmul.f32 1.442695, %v247_v18  ;;  %v233_v26 = vadd.f32 %v713_v25, %v215_v4  ;;  %v199_v27 = vsub.f32 0.0, %v167_v24  ;;  %v164_v28 = vpop.xlane.xlu0 %163 }
  0xc2   :  { %v262_v29 = vmul.f32 1.442695, %v245_v20  ;;  %v232_v30 = vadd.f32 %v713_v25, %v214_v22  ;;  %v198_v31 = vsub.f32 0.0, %v164_v28 }
  0xc3   :  { %398 = vpow2.f32 %v266_v5  ;;  %v249_v9 = vsub.f32 0.0, %v233_v26  ;;  %v217_v32 = vmul.f32 %v708_v50, %v199_v27 }
  0xc4   :  { %400 = vpow2.f32 %v262_v29  ;;  %v248_v33 = vsub.f32 0.0, %v232_v30  ;;  %v216_v10 = vmul.f32 %v708_v50, %v198_v31  ;;  %v173_v34 = vpop.xlane.xlu1 %172 }
  0xc5   :  { %v270_v35 = vmul.f32 1.442695, %v249_v9  ;;  %v235_v36 = vadd.f32 %v713_v25, %v217_v32  ;;  %v201_v37 = vsub.f32 0.0, %v173_v34  ;;  %v170_v38 = vpop.xlane.xlu0 %169 }
  0xc6   :  { %v268_v12 = vmul.f32 1.442695, %v248_v33  ;;  %v234_v39 = vadd.f32 %v713_v25, %v216_v10  ;;  %v200_v40 = vsub.f32 0.0, %v170_v38 }
  0xc7   :  { %402 = vpow2.f32 %v270_v35  ;;  %v251_v13 = vsub.f32 0.0, %v235_v36  ;;  %v219_v41 = vmul.f32 %v708_v50, %v201_v37 }
  0xc8   :  { %404 = vpow2.f32 %v268_v12  ;;  %v250_v42 = vsub.f32 0.0, %v234_v39  ;;  %v218_v43 = vmul.f32 %v708_v50, %v200_v40  ;;  %v179_v44 = vpop.xlane.xlu1 %178 }
  0xc9   :  { %v395_v15 = vpop.eup %394  ;;  %v274_v45 = vmul.f32 1.442695, %v251_v13  ;;  %v237_v17 = vadd.f32 %v713_v25, %v219_v41  ;;  %v203_v46 = vsub.f32 0.0, %v179_v44  ;;  %v176_v47 = vpop.xlane.xlu0 %175 }
  0xca   :  { %v397_v48 = vpop.eup %396  ;;  %v294_v19 = vadd.f32 1.0, %v395_v15  ;;  %v272_v49 = vmul.f32 1.442695, %v250_v42  ;;  %v236_v21 = vadd.f32 %v713_v25, %v218_v43  ;;  %v202_v51 = vsub.f32 0.0, %v176_v47 }
  0xcb   :  { %v292_v52 = vadd.f32 1.0, %v397_v48  ;;  %406 = vpow2.f32 %v274_v45  ;;  %v253_v23 = vsub.f32 0.0, %v237_v17  ;;  %v221_v53 = vmul.f32 %v708_v50, %v203_v46 }
  0xcc   :  { %408 = vrcp.f32 %v294_v19  ;;  %v252_v54 = vsub.f32 0.0, %v236_v21  ;;  %v220_v55 = vmul.f32 %v708_v50, %v202_v51  ;;  %v185_v56 = vpop.xlane.xlu1 %184 }
  0xcd   :  { %v399_v57 = vpop.eup %398  ;;  %410 = vrcp.f32 %v292_v52  ;;  %v278_v58 = vmul.f32 1.442695, %v253_v23  ;;  %v239_v59 = vadd.f32 %v713_v25, %v221_v53  ;;  %v205_v60 = vsub.f32 0.0, %v185_v56  ;;  %v182_v61 = vpop.xlane.xlu0 %181 }
  0xce   :  { %v401_v62 = vpop.eup %400  ;;  %v295_v63 = vadd.f32 1.0, %v399_v57  ;;  %412 = vpow2.f32 %v272_v49  ;;  %v276_v0 = vmul.f32 1.442695, %v252_v54  ;;  %v238_v1 = vadd.f32 %v713_v25, %v220_v55 }
  0xcf   :  { %v293_v2 = vadd.f32 1.0, %v401_v62  ;;  %414 = vpow2.f32 %v278_v58  ;;  %v255_v6 = vsub.f32 0.0, %v239_v59  ;;  %v223_v7 = vmul.f32 %v708_v50, %v205_v60 }
  0xd0   :  { %416 = vrcp.f32 %v295_v63  ;;  %v254_v8 = vsub.f32 0.0, %v238_v1  ;;  %v204_v3 = vsub.f32 0.0, %v182_v61  ;;  %v191_v11 = vpop.xlane.xlu1 %190 }
  0xd1   :  { %v403_v14 = vpop.eup %402  ;;  %418 = vrcp.f32 %v293_v2  ;;  %v282_v16 = vmul.f32 1.442695, %v255_v6  ;;  %v241_v18 = vadd.f32 %v713_v25, %v223_v7  ;;  %v207_v4 = vsub.f32 0.0, %v191_v11  ;;  %v188_v20 = vpop.xlane.xlu0 %187 }
  0xd2   :  { %v405_v22 = vpop.eup %404  ;;  %v297_v24 = vadd.f32 1.0, %v403_v14  ;;  %420 = vpow2.f32 %v276_v0  ;;  %v280_v5 = vmul.f32 1.442695, %v254_v8  ;;  %v222_v26 = vmul.f32 %v708_v50, %v204_v3 }
  0xd3   :  { %v296_v27 = vadd.f32 1.0, %v405_v22  ;;  %422 = vpow2.f32 %v282_v16  ;;  %v257_v28 = vsub.f32 0.0, %v241_v18  ;;  %v225_v29 = vmul.f32 %v708_v50, %v207_v4 }
  0xd4   :  { %424 = vrcp.f32 %v297_v24  ;;  %v240_v30 = vadd.f32 %v713_v25, %v222_v26  ;;  %v206_v31 = vsub.f32 0.0, %v188_v20 }
  0xd5   :  { %v407_v9 = vpop.eup %406  ;;  %426 = vrcp.f32 %v296_v27  ;;  %v286_v32 = vmul.f32 1.442695, %v257_v28  ;;  %v243_v33 = vadd.f32 %v713_v25, %v225_v29 }
  0xd6   :  { %v409_v10 = vpop.eup %408  ;;  %v299_v34 = vadd.f32 1.0, %v407_v9  ;;  %428 = vpow2.f32 %v280_v5  ;;  %v256_v35 = vsub.f32 0.0, %v240_v30  ;;  %v224_v36 = vmul.f32 %v708_v50, %v206_v31 }
  0xd7   :  { %v411_v37 = vpop.eup %410  ;;  %327 = vst.msk [vmem:[#allocation7 + $0x10] sm:$0xff] %vm324_vm1, %v409_v10  ;;  %430 = vpow2.f32 %v286_v32  ;;  %v259_v38 = vsub.f32 0.0, %v243_v33 }
  0xd8   :  { %v413_v12 = vpop.eup %412  ;;  %325 = vst.msk [vmem:[#allocation7] sm:$0xff] %vm324_vm1, %v411_v37  ;;  %432 = vrcp.f32 %v299_v34  ;;  %v284_v39 = vmul.f32 1.442695, %v256_v35  ;;  %v242_v40 = vadd.f32 %v713_v25, %v224_v36 }
  0xd9   :  { %v415_v13 = vpop.eup %414  ;;  %v298_v41 = vadd.f32 1.0, %v413_v12  ;;  %v290_v42 = vmul.f32 1.442695, %v259_v38 }
  0xda   :  { %v417_v43 = vpop.eup %416  ;;  %v301_v44 = vadd.f32 1.0, %v415_v13  ;;  %434 = vpow2.f32 %v284_v39  ;;  %v258_v15 = vsub.f32 0.0, %v242_v40 }
  0xdb   :  { %v419_v50 = vpop.eup %418  ;;  %328 = vst.msk [vmem:[#allocation7 + $0x18] sm:$0xff] %vm324_vm1, %v417_v43  ;;  %436 = vrcp.f32 %v298_v41 }
  0xdc   :  { %v421_v45 = vpop.eup %420  ;;  %326 = vst.msk [vmem:[#allocation7 + $0x8] sm:$0xff] %vm324_vm1, %v419_v50  ;;  %438 = vrcp.f32 %v301_v44  ;;  %v288_v17 = vmul.f32 1.442695, %v258_v15 }
  0xdd   :  { %v423_v46 = vpop.eup %422  ;;  %v300_v47 = vadd.f32 1.0, %v421_v45  ;;  %440 = vpow2.f32 %v290_v42 }
  0xde   :  { %v425_v25 = vpop.eup %424  ;;  %v303_v48 = vadd.f32 1.0, %v423_v46  ;;  %442 = vpow2.f32 %v288_v17 }
  0xdf   :  { %v427_v19 = vpop.eup %426  ;;  %330 = vst.msk [vmem:[#allocation7 + $0x28] sm:$0xff] %vm324_vm1, %v425_v25  ;;  %444 = vrcp.f32 %v300_v47 }
  0xe0   :  { %v429_v49 = vpop.eup %428  ;;  %329 = vst.msk [vmem:[#allocation7 + $0x20] sm:$0xff] %vm324_vm1, %v427_v19  ;;  %446 = vrcp.f32 %v303_v48 }
  0xe1   :  { %v431_v21 = vpop.eup %430  ;;  %v302_v51 = vadd.f32 1.0, %v429_v49 }
  0xe2   :  { %v433_v52 = vpop.eup %432  ;;  %v305_v23 = vadd.f32 1.0, %v431_v21 }
  0xe3   :  { %332 = vst.msk [vmem:[#allocation7 + $0x38] sm:$0xff] %vm324_vm1, %v433_v52  ;;  %448 = vrcp.f32 %v302_v51 }
  0xe4   :  { %v435_v53 = vpop.eup %434  ;;  %450 = vrcp.f32 %v305_v23 }
  0xe5   :  { %v437_v54 = vpop.eup %436  ;;  %v304_v55 = vadd.f32 1.0, %v435_v53 }
  0xe6   :  { %v439_v56 = vpop.eup %438  ;;  %331 = vst.msk [vmem:[#allocation7 + $0x30] sm:$0xff] %vm324_vm1, %v437_v54 }
  0xe7   :  { %v441_v57 = vpop.eup %440  ;;  %334 = vst.msk [vmem:[#allocation7 + $0x48] sm:$0xff] %vm324_vm1, %v439_v56  ;;  %452 = vrcp.f32 %v304_v55 }
  0xe8   :  { %v443_v58 = vpop.eup %442  ;;  %v307_v59 = vadd.f32 1.0, %v441_v57 }
  0xe9   :  { %v445_v60 = vpop.eup %444  ;;  %v306_v61 = vadd.f32 1.0, %v443_v58 }
  0xea   :  { %v447_v62 = vpop.eup %446  ;;  %333 = vst.msk [vmem:[#allocation7 + $0x40] sm:$0xff] %vm324_vm1, %v445_v60  ;;  %454 = vrcp.f32 %v307_v59 }
  0xeb   :  { %336 = vst.msk [vmem:[#allocation7 + $0x58] sm:$0xff] %vm324_vm1, %v447_v62  ;;  %456 = vrcp.f32 %v306_v61 }
  0xed   :  { %v449_v63 = vpop.eup %448 }
  0xee   :  { %v451_v0 = vpop.eup %450  ;;  %335 = vst.msk [vmem:[#allocation7 + $0x50] sm:$0xff] %vm324_vm1, %v449_v63 }
  0xef   :  { %338 = vst.msk [vmem:[#allocation7 + $0x68] sm:$0xff] %vm324_vm1, %v451_v0 }
  0xf1   :  { %v453_v1 = vpop.eup %452 }
  0xf2   :  { %337 = vst.msk [vmem:[#allocation7 + $0x60] sm:$0xff] %vm324_vm1, %v453_v1 }
  0xf4   :  { %v455_v2 = vpop.eup %454 }
  0xf5   :  { %v457_v6 = vpop.eup %456  ;;  %340 = vst.msk [vmem:[#allocation7 + $0x78] sm:$0xff] %vm324_vm1, %v455_v2 }
  0xf6   :  { %339 = vst.msk [vmem:[#allocation7 + $0x70] sm:$0xff] %vm324_vm1, %v457_v6 }
  0xf7   :  { %491 = shalt.err (!%p488_p12)
}
  0xf8   :  { %s492_s5 = scalar_lea.hbm %s781_s3, 2048 }
  0xf9   :  { %p493_p13 = scmp.ne.s32.totalorder %s781_s3, %s492_s5  ;;  %p496_p0 = scmp.lt.u32.totalorder %s492_s5, %s781_s3 }
  0xfb   :  { %p498_p1 = pnand %p496_p0, %p493_p13 }
  0xfd   :  { %501 = shalt.err (!%p498_p1)
}
  0xfe   :  { %352 = dma.vmem_to_hbm [thread:$0]  %s347_s1, 2048, %s781_s3, [#allocation6], %s507_s22, %s507_s22, %s508_s23  }
  0xff   :  { %504 = dma.done.wait [#allocation6], 2048  }
 0x100   :  { %505 = vsyncadd [#allocation6], 4294965248 }
 0x101   :  { %356 = vsyncpa [#allocation5], 1 }
 0x102   :  { %357 = vsyncpa [#allocation6], 1 }

</bundles_post_ra>
